<compile_context>
chip_gen: v7x
topology: tpu7x:2x2x1
jax: 0.10.0
libtpu: 0.0.40
codegen_flags: <defaults>
</compile_context>

<pallas_src>
import functools

import jax
import jax.numpy as jnp
from jax.experimental import pallas as pl
from jax.experimental.pallas import tpu as pltpu


def backbone_update_kernel(s_ref, w_ref, b_ref, o_ref, *, compute_dtype):
    # s_ref: (tile_m, C_s) in s's native dtype (VMEM), w_ref: (C_s, 6) bf16
    # (resident), b_ref: (1, 6) f32 (resident), o_ref: (tile_m, 6).
    a = s_ref[...].astype(compute_dtype)          # in-register cast (VPU), free-ish
    acc = jnp.dot(a, w_ref[...], preferred_element_type=jnp.float32)
    o_ref[...] = (acc + b_ref[...]).astype(o_ref.dtype)


def _choose_tile_m(m, c_s, out_dim, in_itemsize, out_itemsize, tile_m=None):
    """Pick (tile_m, grid_m) for the row-streaming grid."""
    ROW_ALIGN = 16  # multiple of both f32 (8) and bf16 (16) sublane packing
    rup = lambda x, n: ((x + n - 1) // n) * n
    rdown = lambda x, n: (x // n) * n

    if tile_m is None:
        # DMA amortization: >= ~2 MiB of input bytes per grid step.
        tile = max((2 << 20) // max(c_s * in_itemsize, 1), 1024)
        # VMEM budget: 12 MiB for double-buffered input + output blocks — safe
        # under the smallest default scoped VMEM of any generation (v5e 16 MiB,
        # v6e/v7x 32 MiB), so no vmem_limit_bytes override is needed anywhere.
        per_row = 2 * c_s * in_itemsize + 2 * out_dim * out_itemsize
        tile = min(tile, max((12 << 20) // per_row, ROW_ALIGN))
        # Large inputs: keep >= ~4 grid steps so the "parallel" row axis shards
        # across v7x's two TensorCores (measured no-op on single-TC v5e/v6e).
        if m >= 8192:
            tile = min(tile, rup(-(-m // 4), ROW_ALIGN))
    else:
        tile = int(tile_m)

    if tile >= m:
        return m, 1                      # one block == full array (alignment-exempt)
    tile = max(rdown(tile, ROW_ALIGN), ROW_ALIGN)
    if tile >= m:
        return m, 1
    return tile, -(-m // tile)           # cdiv; ragged tail masked by Pallas


def backbone_update(s, weight, bias, *, tile_m=None,
                    compute_dtype=jnp.bfloat16, out_dtype=None):
    """BackboneUpdate forward: s @ weight.T + bias.

    s:      [..., N_res, C_s] (read in its native dtype, bf16 cast in-kernel)
    weight: [6, C_s]  (PyTorch Linear convention)
    bias:   [6]
    returns [..., N_res, 6] in `out_dtype` (default: s.dtype)
    """
    *lead, c_s = s.shape
    out_dim, c_s_w = weight.shape
    assert c_s_w == c_s, (c_s_w, c_s)
    out_dtype = s.dtype if out_dtype is None else jnp.dtype(out_dtype)

    m = 1
    for d in lead:
        m *= d
    if m == 0:  # empty leading dims: avoid a zero-size grid pallas_call
        return jnp.zeros((*lead, out_dim), dtype=out_dtype)

    s2 = s.reshape(m, c_s)                      # metadata-only; no cast, no pad
    w2 = weight.T.astype(compute_dtype)         # tiny [C_s, 6], VMEM-resident
    b2 = bias.reshape(1, out_dim).astype(jnp.float32)

    in_bytes = s2.dtype.itemsize
    out_bytes = jnp.dtype(out_dtype).itemsize
    tile_m_eff, grid_m = _choose_tile_m(m, c_s, out_dim, in_bytes, out_bytes,
                                        tile_m)

    cost = pl.CostEstimate(
        flops=2 * m * c_s * out_dim,
        transcendentals=0,
        bytes_accessed=(m * c_s * in_bytes
                        + c_s * out_dim * w2.dtype.itemsize
                        + m * out_dim * out_bytes),
    )

    kernel = functools.partial(backbone_update_kernel,
                               compute_dtype=compute_dtype)

    out = pl.pallas_call(
        kernel,
        out_shape=jax.ShapeDtypeStruct((m, out_dim), out_dtype),
        grid_spec=pltpu.PrefetchScalarGridSpec(
            num_scalar_prefetch=0,
            grid=(grid_m,),
            in_specs=[
                pl.BlockSpec((tile_m_eff, c_s), lambda i: (i, 0)),  # row stream
                pl.BlockSpec((c_s, out_dim), lambda i: (0, 0)),     # resident W^T
                pl.BlockSpec((1, out_dim), lambda i: (0, 0)),       # resident b
            ],
            out_specs=pl.BlockSpec((tile_m_eff, out_dim), lambda i: (i, 0)),
        ),
        compiler_params=pltpu.CompilerParams(
            dimension_semantics=("parallel",)),
        cost_estimate=cost,
    )(s2, w2, b2)

    return out.reshape(*lead, out_dim)


def _reference(s, weight, bias, compute_dtype=jnp.bfloat16, out_dtype=None):
    """Pure-JAX reference with identical bf16-input / f32-accumulate numerics."""
    out_dtype = s.dtype if out_dtype is None else jnp.dtype(out_dtype)
    a = s.astype(compute_dtype)
    w = weight.T.astype(compute_dtype)
    ref = jnp.dot(a, w, preferred_element_type=jnp.float32) + bias.astype(jnp.float32)
    return ref.astype(out_dtype)


if __name__ == "__main__":
    c_s = 32
    key = jax.random.PRNGKey(0)
    k_w, k_b, k_s1, k_s2 = jax.random.split(key, 4)

    # init='final' would zero everything; use small nonzero params instead so
    # the matmul path is exercised (forward semantics unchanged).
    weight = 0.02 * jax.random.normal(k_w, (6, c_s), dtype=jnp.float32)
    bias = 0.01 * jax.random.normal(k_b, (6,), dtype=jnp.float32)

    # Test 1: module-sized input (batch=2, N_res=8, C_s=32) -> single full block.
    s1 = jax.random.normal(k_s1, (2, 8, c_s), dtype=jnp.float32)
    out1 = jax.block_until_ready(backbone_update(s1, weight, bias))
    ref1 = _reference(s1, weight, bias)
    assert out1.shape == (2, 8, 6) and out1.dtype == s1.dtype
    assert jnp.allclose(out1, ref1, atol=1e-4, rtol=1e-4)

    # Test 2: non-divisible row count (m=21) with a forced small tile ->
    # multi-step "parallel" grid and a ragged tail block handled entirely
    # in-kernel (no wrapper pad / slice).
    s2 = jax.random.normal(k_s2, (3, 7, c_s), dtype=jnp.float32)
    out2 = jax.block_until_ready(backbone_update(s2, weight, bias, tile_m=16))
    ref2 = _reference(s2, weight, bias)
    assert out2.shape == (3, 7, 6)
    assert jnp.allclose(out2, ref2, atol=1e-4, rtol=1e-4)

    # Test 3: empty leading dim -> early return, no zero-size grid.
    s3 = jnp.zeros((0, 8, c_s), dtype=jnp.float32)
    out3 = jax.block_until_ready(backbone_update(s3, weight, bias))
    assert out3.shape == (0, 8, 6)

    print("KERNEL_OK")
</pallas_src>

<mosaic_0001>
module attributes {stable_mosaic.version = 11 : i64} {
  func.func @backbone_update_kernel(%arg0: i32, %arg1: memref<16x32xf32, #tpu.memory_space<vmem>>, %arg2: memref<32x6xbf16, #tpu.memory_space<vmem>>, %arg3: memref<1x6xf32, #tpu.memory_space<vmem>>, %arg4: memref<16x6xf32, #tpu.memory_space<vmem>>) attributes {dimension_semantics = [#tpu.dimension_semantics<parallel>], iteration_bounds = array<i64: 1>, scalar_prefetch = 0 : i64, scratch_operands = 0 : i64, tpu.core_type = #tpu.core_type<tc>, window_params = [{transform_indices = @transform_0, window_bounds = array<i64: 16, 32>}, {pipeline_mode = #tpu.pipeline_mode<synchronous>, transform_indices = @transform_1, window_bounds = array<i64: 32, 6>}, {pipeline_mode = #tpu.pipeline_mode<synchronous>, transform_indices = @transform_2, window_bounds = array<i64: 1, 6>}, {transform_indices = @transform_3, window_bounds = array<i64: 16, 6>}]} {
    %c0 = arith.constant 0 : index
    %c0_0 = arith.constant 0 : index
    %0 = vector.load %arg1[%c0, %c0_0] : memref<16x32xf32, #tpu.memory_space<vmem>>, vector<16x32xf32>
    %1 = arith.truncf %0 : vector<16x32xf32> to vector<16x32xbf16>
    %c0_1 = arith.constant 0 : index
    %c0_2 = arith.constant 0 : index
    %2 = vector.load %arg2[%c0_1, %c0_2] : memref<32x6xbf16, #tpu.memory_space<vmem>>, vector<32x6xbf16>
    %cst = arith.constant dense<0.000000e+00> : vector<16x6xf32>
    %3 = tpu.matmul %1, %2, %cst {dimension_numbers = #tpu.dot_dimension_numbers<[1], [0], [0], [1], [0, 0, 1, 1], [], []>} : vector<16x32xbf16>, vector<32x6xbf16>, vector<16x6xf32> -> vector<16x6xf32>
    %c0_3 = arith.constant 0 : index
    %c0_4 = arith.constant 0 : index
    %4 = vector.load %arg3[%c0_3, %c0_4] : memref<1x6xf32, #tpu.memory_space<vmem>>, vector<1x6xf32>
    %5 = vector.broadcast %4 : vector<1x6xf32> to vector<16x6xf32>
    %6 = arith.addf %3, %5 : vector<16x6xf32>
    %c0_5 = arith.constant 0 : index
    %c0_6 = arith.constant 0 : index
    %7 = vector.load %arg4[%c0_5, %c0_6] : memref<16x6xf32, #tpu.memory_space<vmem>>, vector<16x6xf32>
    tpu.vector_store %arg4[%c0_5, %c0_6], %6 {strides = array<i32>} : memref<16x6xf32, #tpu.memory_space<vmem>>, vector<16x6xf32>,
    return
  }
  func.func @transform_0(%arg0: i32) -> (i32, i32) {
    %c0_i32 = arith.constant 0 : i32
    %c0_i32_0 = arith.constant 0 : i32
    return %arg0, %c0_i32 : i32, i32
  }
  func.func @transform_1(%arg0: i32) -> (i32, i32) {
    %c0_i32 = arith.constant 0 : i32
    %c0_i32_0 = arith.constant 0 : i32
    %c0_i32_1 = arith.constant 0 : i32
    return %c0_i32, %c0_i32_0 : i32, i32
  }
  func.func @transform_2(%arg0: i32) -> (i32, i32) {
    %c0_i32 = arith.constant 0 : i32
    %c0_i32_0 = arith.constant 0 : i32
    %c0_i32_1 = arith.constant 0 : i32
    return %c0_i32, %c0_i32_0 : i32, i32
  }
  func.func @transform_3(%arg0: i32) -> (i32, i32) {
    %c0_i32 = arith.constant 0 : i32
    %c0_i32_0 = arith.constant 0 : i32
    return %arg0, %c0_i32 : i32, i32
  }
}

</mosaic_0001>

<bundles_post_ra>
// kernel: tpu_custom_call.1
= control target key start
LH: loop header
LB: loop body
LE: loop exit
PB: predicated region body
PF: predicated region fallthrough
CT: control target
= control target key end

     0   :  { %v112_v0 = vmov 0.0   ;;  %vm113_vm0 = vmmov 0   ;;  %vm41_vm1 = vcmask 261120   ;;  %vm86_vm2 = vcmask 48128   ;;  %s155_s1 = inlined_call_operand.vmem [shape: bf16[32,6], index: 1, kind: input, shape index: {}]   ;;  %s156_s0 = inlined_call_operand.vmem [shape: f32[16,32], index: 0, kind: input, shape index: {}]   ;;  %s157_s2 = inlined_call_operand.vmem [shape: f32[1,6], index: 2, kind: input, shape index: {}]   ;;  %s158_s3 = inlined_call_operand.vmem [shape: f32[16,6], index: 3, kind: output, shape index: {}]  }
   0x1   :  { %100 = vmatprep.subr.bf16.mxu0 %v112_v0  ;;  %v110_v1 = vld [vmem:[%s155_s1] sm:$0xff]   ;;  %104 = vmatprep.mubr.msk.bf16.mxu0 %vm113_vm0, %v112_v0  ;;  %v111_v2 = vld [vmem:[%s155_s1 + $0x8] sm:$0xff]  }
   0x2   :  { %101 = vmatpush3.bf16.msra.mxu0 %v110_v1  ;;  %v15_v3 = vld [vmem:[%s156_s0] sm:$0xff]  ;;  %v16_v4 = vld [vmem:[%s156_s0 + $0x8] sm:$0xff] }
   0x3   :  { %102 = vmatprep.subr.bf16.mxu0 %v112_v0  ;;  %v17_v5 = vpack.c.bf16 %v16_v4, %v15_v3  ;;  %v93_v6 = vld [vmem:[%s157_s2] ss:$0 sm:$0xff] }
   0x6   :  { %103 = vmatpush3.bf16.msra.mxu0 %v111_v2 }
   0x9   :  { %105 = vmatmul.mubr.msk.bf16.vlgmr.msra.gmra.mrb[0].mxu0 %vm41_vm1, %v17_v5 }
  0xdc   :  { %v79_v7 = vpop.f32.mrb[0].mxu0 }
  0xdd   :  { %v80_v8 = vadd.f32 %v93_v6, %v79_v7  ;;  %v106_v9 = vpop.f32.mrb[1].mxu0 }
  0xde   :  { %v82_v10 = vpop.f32.mrb[2].mxu0 }
  0xdf   :  { %87 = vst.msk [vmem:[%s158_s3] sm:$0xff] %vm86_vm2, %v80_v8  ;;  %v83_v11 = vadd.f32 %v93_v6, %v82_v10  ;;  %v107_v12 = vpop.f32.mrb[3].mxu0 }
  0xe1   :  { %88 = vst.msk [vmem:[%s158_s3 + $0x8] sm:$0xff] %vm86_vm2, %v83_v11 }

</bundles_post_ra>
